<compile_context>
chip_gen: v6e
topology: v6e:2x2x1
jax: 0.10.0
libtpu: 0.0.40
codegen_flags: <defaults>
</compile_context>

<pallas_src>
import math

import jax
import jax.numpy as jnp
from jax.experimental import pallas as pl


# --------------------------------------------------------------------------
# helpers
# --------------------------------------------------------------------------
def _spec(shape):
    zeros = (0,) * len(shape)
    return pl.BlockSpec(shape, lambda i, _z=zeros: _z)


def one_hot_batch(batch, num_graphs):
    return (batch[:, None] == jnp.arange(num_graphs)[None, :]).astype(jnp.float32)


def one_hot_batch_t(batch, num_graphs):
    # constructed already transposed: (G, n) -- avoids a wrapper-side XLA transpose
    return (jnp.arange(num_graphs)[:, None] == batch[None, :]).astype(jnp.float32)


# --------------------------------------------------------------------------
# Pallas kernels (each one fused stage, whole-array blocks, grid=(1,))
# --------------------------------------------------------------------------
def gcn_conv_fused(x, A, W, b, relu=True):
    """out = act( D^-1/2 (A + I) D^-1/2 (X W) + b )  -- dense, symmetric A."""
    x = x.astype(jnp.float32)
    A = A.astype(jnp.float32)
    W = W.astype(jnp.float32)
    N, F = x.shape
    H = W.shape[1]
    b2 = b.reshape(1, H).astype(jnp.float32)

    def kernel(x_ref, a_ref, w_ref, b_ref, o_ref):
        a = a_ref[...]
        row = jax.lax.broadcasted_iota(jnp.int32, (N, N), 0)
        col = jax.lax.broadcasted_iota(jnp.int32, (N, N), 1)
        a_hat = a + jnp.where(row == col, 1.0, 0.0).astype(jnp.float32)
        # undirected graph => A symmetric => row sums == col sums (same deg vector)
        dinv_r = jax.lax.rsqrt(jnp.sum(a_hat, axis=1, keepdims=True))   # (N,1)
        dinv_c = jax.lax.rsqrt(jnp.sum(a_hat, axis=0, keepdims=True))   # (1,N)
        a_norm = a_hat * dinv_r * dinv_c
        xw = jnp.dot(x_ref[...].astype(jnp.bfloat16),
                     w_ref[...].astype(jnp.bfloat16),
                     preferred_element_type=jnp.float32)                 # (N,H)
        y = jnp.dot(a_norm.astype(jnp.bfloat16), xw.astype(jnp.bfloat16),
                    preferred_element_type=jnp.float32) + b_ref[...]
        if relu:
            y = jnp.maximum(y, 0.0)
        o_ref[...] = y

    return pl.pallas_call(
        kernel,
        out_shape=jax.ShapeDtypeStruct((N, H), jnp.float32),
        grid=(1,),
        in_specs=[_spec((N, F)), _spec((N, N)), _spec((F, H)), _spec((1, H))],
        out_specs=_spec((N, H)),
    )(x, A, W, b2)


def att_pool_fused(x, onehot, onehot_t, inv_counts, W):
    """Fused global_pool (GLOBAL_POOL == 'ATT'):
       x_mean = segment_mean(x); c = tanh(x_mean @ W);
       alpha  = sigmoid(<x, c[batch]>); out = segment_sum(x * alpha)."""
    x = x.astype(jnp.float32)
    n, D = x.shape
    G = onehot.shape[1]

    def kernel(x_ref, oh_ref, oht_ref, ic_ref, w_ref, o_ref):
        xv = x_ref[...]
        oh = oh_ref[...].astype(jnp.bfloat16)
        oht = oht_ref[...].astype(jnp.bfloat16)
        xsum = jnp.dot(oht, xv.astype(jnp.bfloat16),
                       preferred_element_type=jnp.float32)               # (G,D) add-pool
        xmean = xsum * ic_ref[...]                                       # mean-pool
        c = jnp.tanh(jnp.dot(xmean.astype(jnp.bfloat16),
                             w_ref[...].astype(jnp.bfloat16),
                             preferred_element_type=jnp.float32))        # (G,D)
        c_nodes = jnp.dot(oh, c.astype(jnp.bfloat16),
                          preferred_element_type=jnp.float32)            # (n,D) repeat
        logit = jnp.sum(xv * c_nodes, axis=1, keepdims=True)             # (n,1)
        alpha = 1.0 / (1.0 + jnp.exp(-logit))                            # sigmoid
        xw = xv * alpha
        o_ref[...] = jnp.dot(oht, xw.astype(jnp.bfloat16),
                             preferred_element_type=jnp.float32)         # (G,D)

    return pl.pallas_call(
        kernel,
        out_shape=jax.ShapeDtypeStruct((G, D), jnp.float32),
        grid=(1,),
        in_specs=[_spec((n, D)), _spec((n, G)), _spec((G, n)),
                  _spec((G, 1)), _spec((D, D))],
        out_specs=_spec((G, D)),
    )(x, onehot, onehot_t, inv_counts.astype(jnp.float32), W.astype(jnp.float32))


def cag_score_fused(x, onehot, pool_vector, eps=1e-12):
    """score[i] = <x[i], pv[batch[i]]> / (||pv[batch[i]]||_2 + eps)."""
    x = x.astype(jnp.float32)
    n, D = x.shape
    G = onehot.shape[1]

    def kernel(x_ref, oh_ref, pv_ref, o_ref):
        xv = x_ref[...]
        x_rep = jnp.dot(oh_ref[...].astype(jnp.bfloat16),
                        pv_ref[...].astype(jnp.bfloat16),
                        preferred_element_type=jnp.float32)              # (n,D) repeat
        num = jnp.sum(xv * x_rep, axis=1, keepdims=True)
        den = jnp.sqrt(jnp.sum(x_rep * x_rep, axis=1, keepdims=True)) + eps
        o_ref[...] = num / den

    return pl.pallas_call(
        kernel,
        out_shape=jax.ShapeDtypeStruct((n, 1), jnp.float32),
        grid=(1,),
        in_specs=[_spec((n, D)), _spec((n, G)), _spec((G, D))],
        out_specs=_spec((n, 1)),
    )(x, onehot, pool_vector.astype(jnp.float32))


def gate_scale_fused(x_p, score_p):
    """o = x_p * sigmoid(score_p)  (row broadcast)."""
    x_p = x_p.astype(jnp.float32)
    s = score_p.astype(jnp.float32)
    k, D = x_p.shape

    def kernel(x_ref, s_ref, o_ref):
        gate = 1.0 / (1.0 + jnp.exp(-s_ref[...]))
        o_ref[...] = x_ref[...] * gate

    return pl.pallas_call(
        kernel,
        out_shape=jax.ShapeDtypeStruct((k, D), jnp.float32),
        grid=(1,),
        in_specs=[_spec((k, D)), _spec((k, 1))],
        out_specs=_spec((k, D)),
    )(x_p, s)


def pallas_linear(x, W, b=None, act=None):
    """One linear layer; bias operand only when a bias exists (no dummy input)."""
    x = x.astype(jnp.float32)
    W = W.astype(jnp.float32)
    M, K = x.shape
    N = W.shape[1]

    if b is not None:
        b2 = b.reshape(1, N).astype(jnp.float32)

        def kernel(x_ref, w_ref, b_ref, o_ref):
            y = jnp.dot(x_ref[...].astype(jnp.bfloat16),
                        w_ref[...].astype(jnp.bfloat16),
                        preferred_element_type=jnp.float32) + b_ref[...]
            if act == "relu":
                y = jnp.maximum(y, 0.0)
            elif act == "tanh":
                y = jnp.tanh(y)
            o_ref[...] = y

        return pl.pallas_call(
            kernel,
            out_shape=jax.ShapeDtypeStruct((M, N), jnp.float32),
            grid=(1,),
            in_specs=[_spec((M, K)), _spec((K, N)), _spec((1, N))],
            out_specs=_spec((M, N)),
        )(x, W, b2)

    def kernel(x_ref, w_ref, o_ref):
        y = jnp.dot(x_ref[...].astype(jnp.bfloat16),
                    w_ref[...].astype(jnp.bfloat16),
                    preferred_element_type=jnp.float32)
        if act == "relu":
            y = jnp.maximum(y, 0.0)
        elif act == "tanh":
            y = jnp.tanh(y)
        o_ref[...] = y

    return pl.pallas_call(
        kernel,
        out_shape=jax.ShapeDtypeStruct((M, N), jnp.float32),
        grid=(1,),
        in_specs=[_spec((M, K)), _spec((K, N))],
        out_specs=_spec((M, N)),
    )(x, W)


def mlp_head_fused(x, W1, b1, W2, b2, W3, b3):
    """pred = lin3(relu(lin2(relu(lin1(x)))))  in a single kernel."""
    x = x.astype(jnp.float32)
    B, K1 = x.shape
    H1, H2, C = W1.shape[1], W2.shape[1], W3.shape[1]
    b1r = b1.reshape(1, H1).astype(jnp.float32)
    b2r = b2.reshape(1, H2).astype(jnp.float32)
    b3r = b3.reshape(1, C).astype(jnp.float32)

    def kernel(x_ref, w1, b1_, w2, b2_, w3, b3_, o_ref):
        h = jnp.dot(x_ref[...].astype(jnp.bfloat16), w1[...].astype(jnp.bfloat16),
                    preferred_element_type=jnp.float32) + b1_[...]
        h = jnp.maximum(h, 0.0)
        h = jnp.dot(h.astype(jnp.bfloat16), w2[...].astype(jnp.bfloat16),
                    preferred_element_type=jnp.float32) + b2_[...]
        h = jnp.maximum(h, 0.0)
        o_ref[...] = jnp.dot(h.astype(jnp.bfloat16), w3[...].astype(jnp.bfloat16),
                             preferred_element_type=jnp.float32) + b3_[...]

    return pl.pallas_call(
        kernel,
        out_shape=jax.ShapeDtypeStruct((B, C), jnp.float32),
        grid=(1,),
        in_specs=[_spec((B, K1)), _spec((K1, H1)), _spec((1, H1)),
                  _spec((H1, H2)), _spec((1, H2)),
                  _spec((H2, C)), _spec((1, C))],
        out_specs=_spec((B, C)),
    )(x, W1.astype(jnp.float32), b1r, W2.astype(jnp.float32), b2r,
      W3.astype(jnp.float32), b3r)


# --------------------------------------------------------------------------
# CAGpool forward (glue in plain JAX, heavy ops via the fused kernels above)
# --------------------------------------------------------------------------
def _topk_perm(score, num_graphs, seg_size, ratio):
    # TODO(synk): variable-sized graphs / the -2 padding path of topk() is
    # data-dependent; equal-sized graphs assumed, left in plain JAX.
    k = int(math.ceil(ratio * seg_size))
    score_d = score.reshape(num_graphs, seg_size)
    order = jnp.argsort(-score_d, axis=1)                      # descending
    perm = (order[:, :k] + (jnp.arange(num_graphs) * seg_size)[:, None]).reshape(-1)
    return perm


def cagpool_forward(params, x, A, batch, c1, c2, ratio, nhid, num_layer):
    batch_size = len(c1)
    D = nhid * num_layer

    # ---- GCN stack + concat of layer outputs (2 fused kernel calls)
    h1 = gcn_conv_fused(x, A, params["conv1_W"], params["conv1_b"], relu=True)
    h2 = gcn_conv_fused(h1, A, params["conv2_W"], params["conv2_b"], relu=True)
    h = jnp.concatenate([h1, h2], axis=1)                      # (N, D)

    # ---- split into c1 / c2 node blocks (static python index lists)
    c1_idx, c2_idx = [], []
    off = 0
    for i in range(batch_size):
        c1_idx.extend(range(off, off + c1[i]))
        c2_idx.extend(range(off + c1[i], off + c1[i] + c2[i]))
        off += c1[i] + c2[i]
    c1_idx = jnp.array(c1_idx, jnp.int32)
    c2_idx = jnp.array(c2_idx, jnp.int32)

    x_c1, x_c2 = h[c1_idx], h[c2_idx]
    batch_c1, batch_c2 = batch[c1_idx], batch[c2_idx]
    batch_ = jnp.concatenate([batch_c1, batch_c2 + batch_size], axis=0)
    A_c1 = A[c1_idx][:, c1_idx]
    A_c2 = A[c2_idx][:, c2_idx]

    # ---- attention global pool over both components jointly (1 fused kernel)
    x_comb = jnp.concatenate([x_c1, x_c2], axis=0)             # (n_tot, D)
    G2 = 2 * batch_size
    onehot2 = one_hot_batch(batch_, G2)                        # (n_tot, 2B)
    onehot2_t = one_hot_batch_t(batch_, G2)                    # (2B, n_tot)
    inv_counts2 = (1.0 / jnp.maximum(jnp.sum(onehot2, axis=0), 1.0))[:, None]
    gp = att_pool_fused(x_comb, onehot2, onehot2_t, inv_counts2,
                        params["att_pool_W"])                  # (2B, D)
    gp_c1, gp_c2 = gp[:batch_size], gp[batch_size:]

    pv = pallas_linear(jnp.concatenate([gp_c1, gp_c2], axis=1),
                       params["att_lin_W"], params["att_lin_b"])   # (B, 2D)
    pv_c1, pv_c2 = pv[:, :D], pv[:, D:]

    # ---- CAG scores for BOTH components in one fused kernel (2B-graph onehot)
    pv_all = jnp.concatenate([pv_c1, pv_c2], axis=0)           # (2B, D)
    score_all = cag_score_fused(x_comb, onehot2, pv_all)       # (n_tot, 1)
    n_c1 = x_c1.shape[0]
    score_c1 = score_all[:n_c1, 0]
    score_c2 = score_all[n_c1:, 0]

    # ---- per-component top-k (plain JAX argsort / gather)
    perm1 = _topk_perm(score_c1, batch_size, c1[0], ratio)
    perm2 = _topk_perm(score_c2, batch_size, c2[0], ratio)

    # ---- batched gate: x[perm] * sigmoid(score[perm]) for both components at once
    x_p_all = jnp.concatenate([x_c1[perm1], x_c2[perm2]], axis=0)
    s_p_all = jnp.concatenate([score_c1[perm1], score_c2[perm2]], axis=0)[:, None]
    x_pooled = gate_scale_fused(x_p_all, s_p_all)              # (k1+k2, D)

    b_p1 = batch_c1[perm1]
    b_p2 = batch_c2[perm2]

    # filter_adj (dense) + block-diagonal combined adjacency (components disconnected)
    A_p1 = A_c1[perm1][:, perm1]
    A_p2 = A_c2[perm2][:, perm2]
    n1, n2 = A_p1.shape[0], A_p2.shape[0]
    A_block = jnp.zeros((n1 + n2, n1 + n2), jnp.float32)
    A_block = A_block.at[:n1, :n1].set(A_p1).at[n1:, n1:].set(A_p2)

    # ---- final GCN on the combined block-diagonal graph (shared weights, 1 call)
    y = gcn_conv_fused(x_pooled, A_block, params["final_conv_W"],
                       params["final_conv_b"], relu=True)      # (k1+k2, nhid)

    # ---- batched final attention pool over 2B graphs (c2 graphs offset by B)
    b_comb = jnp.concatenate([b_p1, b_p2 + batch_size], axis=0)
    onehot_f = one_hot_batch(b_comb, G2)
    onehot_f_t = one_hot_batch_t(b_comb, G2)
    inv_counts_f = (1.0 / jnp.maximum(jnp.sum(onehot_f, axis=0), 1.0))[:, None]
    g = att_pool_fused(y, onehot_f, onehot_f_t, inv_counts_f,
                       params["final_pool_W"])                 # (2B, nhid)
    g1, g2 = g[:batch_size], g[batch_size:]

    # ---- fused MLP head
    pred_in = jnp.concatenate([g1, g2], axis=1)                # (B, 2*nhid)
    pred = mlp_head_fused(pred_in,
                          params["lin1_W"], params["lin1_b"],
                          params["lin2_W"], params["lin2_b"],
                          params["lin3_W"], params["lin3_b"])  # (B, num_class)
    return batch_, None, pred


# --------------------------------------------------------------------------
# Parameter init + synthetic data
# --------------------------------------------------------------------------
def init_params(key, nfeat, nhid, num_layer, num_class):
    D = nhid * num_layer
    shapes = {
        "conv1_W": (nfeat, nhid), "conv1_b": (nhid,),
        "conv2_W": (nhid, nhid), "conv2_b": (nhid,),
        "att_pool_W": (D, D),
        "att_lin_W": (2 * D, 2 * D), "att_lin_b": (2 * D,),
        "final_conv_W": (D, nhid), "final_conv_b": (nhid,),
        "final_pool_W": (nhid, nhid),
        "lin1_W": (2 * nhid, nhid), "lin1_b": (nhid,),
        "lin2_W": (nhid, nhid // 2), "lin2_b": (nhid // 2,),
        "lin3_W": (nhid // 2, num_class), "lin3_b": (num_class,),
    }
    params = {}
    keys = jax.random.split(key, len(shapes))
    for k_, (name, shp) in zip(keys, sorted(shapes.items())):
        params[name] = 0.1 * jax.random.normal(k_, shp, jnp.float32)
    return params


if __name__ == "__main__":
    # config: NUM_FEATURES=16, NUM_HIDDEN=32, NUM_LAYER=2, POOL_RATIO=0.5, NUM_CLASS=2
    nfeat, nhid, num_layer, num_class, ratio = 16, 32, 2, 2, 0.5
    c1 = [4, 4]        # c1 component sizes per graph
    c2 = [4, 4]        # c2 component sizes per graph
    batch_size = len(c1)
    N = sum(c1) + sum(c2)              # 16 nodes total

    key = jax.random.PRNGKey(0)
    k_feat, k_par = jax.random.split(key)

    # node features
    x = jax.random.normal(k_feat, (N, nfeat), jnp.float32)

    # batch vector (nodes of each graph are consecutive: c1 block then c2 block)
    batch_list, A = [], [[0.0] * N for _ in range(N)]
    off = 0
    for g in range(batch_size):
        n_g = c1[g] + c2[g]
        batch_list.extend([g] * n_g)
        # undirected ring inside each graph
        for j in range(n_g):
            a_, b_ = off + j, off + (j + 1) % n_g
            A[a_][b_] = 1.0
            A[b_][a_] = 1.0
        off += n_g
    batch = jnp.array(batch_list, jnp.int32)
    A = jnp.array(A, jnp.float32)

    params = init_params(k_par, nfeat, nhid, num_layer, num_class)

    batch_out, _, pred = cagpool_forward(params, x, A, batch, c1, c2,
                                         ratio, nhid, num_layer)
    jax.block_until_ready(pred)
    assert pred.shape == (batch_size, num_class)
    assert bool(jnp.all(jnp.isfinite(pred)))
    print("KERNEL_OK")
</pallas_src>

<mosaic_0001>
module attributes {stable_mosaic.version = 11 : i64} {
  func.func @kernel(%arg0: i32, %arg1: memref<16x16xf32, #tpu.memory_space<vmem>>, %arg2: memref<16x16xf32, #tpu.memory_space<vmem>>, %arg3: memref<16x32xf32, #tpu.memory_space<vmem>>, %arg4: memref<1x32xf32, #tpu.memory_space<vmem>>, %arg5: memref<16x32xf32, #tpu.memory_space<vmem>>) attributes {dimension_semantics = [#tpu.dimension_semantics<arbitrary>], iteration_bounds = array<i64: 1>, scalar_prefetch = 0 : i64, scratch_operands = 0 : i64, tpu.core_type = #tpu.core_type<tc>, window_params = [{pipeline_mode = #tpu.pipeline_mode<synchronous>, transform_indices = @transform_0, window_bounds = array<i64: 16, 16>}, {pipeline_mode = #tpu.pipeline_mode<synchronous>, transform_indices = @transform_1, window_bounds = array<i64: 16, 16>}, {pipeline_mode = #tpu.pipeline_mode<synchronous>, transform_indices = @transform_2, window_bounds = array<i64: 16, 32>}, {pipeline_mode = #tpu.pipeline_mode<synchronous>, transform_indices = @transform_3, window_bounds = array<i64: 1, 32>}, {pipeline_mode = #tpu.pipeline_mode<synchronous>, transform_indices = @transform_4, window_bounds = array<i64: 16, 32>}]} {
    %c0 = arith.constant 0 : index
    %c0_0 = arith.constant 0 : index
    %0 = vector.load %arg2[%c0, %c0_0] : memref<16x16xf32, #tpu.memory_space<vmem>>, vector<16x16xf32>
    %1 = tpu.iota {dimensions = array<i32: 0>} : vector<16x16xi32>
    %2 = tpu.iota {dimensions = array<i32: 1>} : vector<16x16xi32>
    %3 = arith.cmpi eq, %1, %2 : vector<16x16xi32>
    %cst = arith.constant 1.000000e+00 : f32
    %cst_1 = arith.constant 0.000000e+00 : f32
    %4 = vector.broadcast %cst : f32 to vector<16x16xf32>
    %5 = vector.broadcast %cst_1 : f32 to vector<16x16xf32>
    %6 = arith.select %3, %4, %5 : vector<16x16xi1>, vector<16x16xf32>
    %7 = arith.addf %0, %6 : vector<16x16xf32>
    %cst_2 = arith.constant dense<0.000000e+00> : vector<16xf32>
    %8 = vector.multi_reduction <add>, %7, %cst_2 [1] : vector<16x16xf32> to vector<16xf32>
    %9 = vector.shape_cast %8 : vector<16xf32> to vector<16x1xf32>
    %10 = math.rsqrt %9 : vector<16x1xf32>
    %cst_3 = arith.constant dense<0.000000e+00> : vector<16xf32>
    %11 = vector.multi_reduction <add>, %7, %cst_3 [0] : vector<16x16xf32> to vector<16xf32>
    %12 = vector.shape_cast %11 : vector<16xf32> to vector<1x16xf32>
    %13 = math.rsqrt %12 : vector<1x16xf32>
    %14 = vector.broadcast %10 : vector<16x1xf32> to vector<16x16xf32>
    %15 = arith.mulf %7, %14 : vector<16x16xf32>
    %16 = vector.broadcast %13 : vector<1x16xf32> to vector<16x16xf32>
    %17 = arith.mulf %15, %16 : vector<16x16xf32>
    %c0_4 = arith.constant 0 : index
    %c0_5 = arith.constant 0 : index
    %18 = vector.load %arg1[%c0_4, %c0_5] : memref<16x16xf32, #tpu.memory_space<vmem>>, vector<16x16xf32>
    %19 = arith.truncf %18 : vector<16x16xf32> to vector<16x16xbf16>
    %c0_6 = arith.constant 0 : index
    %c0_7 = arith.constant 0 : index
    %20 = vector.load %arg3[%c0_6, %c0_7] : memref<16x32xf32, #tpu.memory_space<vmem>>, vector<16x32xf32>
    %21 = arith.truncf %20 : vector<16x32xf32> to vector<16x32xbf16>
    %cst_8 = arith.constant dense<0.000000e+00> : vector<16x32xf32>
    %22 = tpu.matmul %19, %21, %cst_8 {dimension_numbers = #tpu.dot_dimension_numbers<[1], [0], [0], [1], [0, 0, 1, 1], [], []>} : vector<16x16xbf16>, vector<16x32xbf16>, vector<16x32xf32> -> vector<16x32xf32>
    %23 = arith.truncf %17 : vector<16x16xf32> to vector<16x16xbf16>
    %24 = arith.truncf %22 : vector<16x32xf32> to vector<16x32xbf16>
    %cst_9 = arith.constant dense<0.000000e+00> : vector<16x32xf32>
    %25 = tpu.matmul %23, %24, %cst_9 {dimension_numbers = #tpu.dot_dimension_numbers<[1], [0], [0], [1], [0, 0, 1, 1], [], []>} : vector<16x16xbf16>, vector<16x32xbf16>, vector<16x32xf32> -> vector<16x32xf32>
    %c0_10 = arith.constant 0 : index
    %c0_11 = arith.constant 0 : index
    %26 = vector.load %arg4[%c0_10, %c0_11] : memref<1x32xf32, #tpu.memory_space<vmem>>, vector<1x32xf32>
    %27 = vector.broadcast %26 : vector<1x32xf32> to vector<16x32xf32>
    %28 = arith.addf %25, %27 : vector<16x32xf32>
    %cst_12 = arith.constant 0.000000e+00 : f32
    %29 = vector.broadcast %cst_12 : f32 to vector<16x32xf32>
    %30 = arith.maximumf %28, %29 : vector<16x32xf32>
    %c0_13 = arith.constant 0 : index
    %c0_14 = arith.constant 0 : index
    %31 = vector.load %arg5[%c0_13, %c0_14] : memref<16x32xf32, #tpu.memory_space<vmem>>, vector<16x32xf32>
    tpu.vector_store %arg5[%c0_13, %c0_14], %30 {strides = array<i32>} : memref<16x32xf32, #tpu.memory_space<vmem>>, vector<16x32xf32>,
    return
  }
  func.func @transform_0(%arg0: i32) -> (i32, i32) {
    %c0_i32 = arith.constant 0 : i32
    %c0_i32_0 = arith.constant 0 : i32
    %c0_i32_1 = arith.constant 0 : i32
    return %c0_i32, %c0_i32_0 : i32, i32
  }
  func.func @transform_1(%arg0: i32) -> (i32, i32) {
    %c0_i32 = arith.constant 0 : i32
    %c0_i32_0 = arith.constant 0 : i32
    %c0_i32_1 = arith.constant 0 : i32
    return %c0_i32, %c0_i32_0 : i32, i32
  }
  func.func @transform_2(%arg0: i32) -> (i32, i32) {
    %c0_i32 = arith.constant 0 : i32
    %c0_i32_0 = arith.constant 0 : i32
    %c0_i32_1 = arith.constant 0 : i32
    return %c0_i32, %c0_i32_0 : i32, i32
  }
  func.func @transform_3(%arg0: i32) -> (i32, i32) {
    %c0_i32 = arith.constant 0 : i32
    %c0_i32_0 = arith.constant 0 : i32
    %c0_i32_1 = arith.constant 0 : i32
    return %c0_i32, %c0_i32_0 : i32, i32
  }
  func.func @transform_4(%arg0: i32) -> (i32, i32) {
    %c0_i32 = arith.constant 0 : i32
    %c0_i32_0 = arith.constant 0 : i32
    %c0_i32_1 = arith.constant 0 : i32
    return %c0_i32, %c0_i32_0 : i32, i32
  }
}

</mosaic_0001>

<bundles_post_ra>
// kernel: tpu_custom_call.1
= control target key start
LH: loop header
LB: loop body
LE: loop exit
PB: predicated region body
PF: predicated region fallthrough
CT: control target
= control target key end

     0   :  { %9 = vsyncpa [#allocation3], 0  ;;  %s403_s0 = inlined_call_operand.hbm [shape: f32[16,16], index: 0, kind: input, shape index: {}]   ;;  %s404_s1 = inlined_call_operand.hbm [shape: f32[16,16], index: 1, kind: input, shape index: {}]   ;;  %s405_s2 = inlined_call_operand.hbm [shape: f32[16,32], index: 2, kind: input, shape index: {}]   ;;  %s406_s3 = inlined_call_operand.vmem [shape: f32[1,32], index: 3, kind: input, shape index: {}]   ;;  %s407_s4 = inlined_call_operand.hbm [shape: f32[16,32], index: 4, kind: output, shape index: {}]  }
   0x1   :  { %10 = vsyncpa [#allocation6], 0 }
   0x2   :  { %11 = vsyncpa [#allocation4], 0  ;;  %s339_s15 = smov [#allocation5]   ;;  %s340_s17 = smov [#allocation2]  }
   0x3   :  { %s29_s16 = sshll.u32 %s339_s15, 4  ;;  %s17_s18 = sshll.u32 %s340_s17, 4  ;;  %s30_s16 = int_to_ptr.vmem [resolvable:$true] %s29_s16  ;;  %s18_s18 = int_to_ptr.vmem [resolvable:$true] %s17_s18 }
   0x4   :  { %s261_s19 = scalar_lea.vmem %s30_s16, 256  ;;  %p266_p1 = scmp.lt.s32.totalorder %s30_s16, %s30_s16 }
   0x5   :  { %p262_p0 = scmp.ne.s32.totalorder %s30_s16, %s261_s19  ;;  %p267_p2 = scmp.lt.s32.totalorder %s261_s19, %s261_s19 }
   0x7   :  { %p268_p3 = por %p267_p2, %p266_p1 }
   0x9   :  { %p269_p4 = pnand %p268_p3, %p262_p0 }
   0xb   :  { %272 = shalt.err (!%p269_p4)
}
   0xc   :  { %s341_s20 = smov 128   ;;  %s342_s21 = smov 8  }
   0xd   :  { %35 = dma.hbm_to_vmem [thread:$0]  %s404_s1, 256, %s30_s16, [#allocation6], %s341_s20, %s341_s20, %s342_s21  }
   0xe   :  { %s281_s24 = scalar_lea.vmem %s18_s18, 256  ;;  %p286_p6 = scmp.lt.s32.totalorder %s18_s18, %s18_s18 }
   0xf   :  { %p282_p5 = scmp.ne.s32.totalorder %s18_s18, %s281_s24  ;;  %p287_p7 = scmp.lt.s32.totalorder %s281_s24, %s281_s24 }
  0x11   :  { %p288_p8 = por %p287_p7, %p286_p6 }
  0x13   :  { %p289_p9 = pnand %p288_p8, %p282_p5 }
  0x15   :  { %292 = shalt.err (!%p289_p9)
}
  0x16   :  { %23 = dma.hbm_to_vmem [thread:$0]  %s403_s0, 256, %s18_s18, [#allocation3], %s341_s20, %s341_s20, %s342_s21  }
  0x17   :  { %s343_s27 = smov [#allocation7]  }
  0x18   :  { %s41_s28 = sshll.u32 %s343_s27, 4  ;;  %s42_s28 = int_to_ptr.vmem [resolvable:$true] %s41_s28 }
  0x19   :  { %s301_s29 = scalar_lea.vmem %s42_s28, 256  ;;  %p306_p11 = scmp.lt.s32.totalorder %s42_s28, %s42_s28 }
  0x1a   :  { %p302_p10 = scmp.ne.s32.totalorder %s42_s28, %s301_s29  ;;  %p307_p12 = scmp.lt.s32.totalorder %s301_s29, %s301_s29 }
  0x1c   :  { %p308_p13 = por %p307_p12, %p306_p11 }
  0x1e   :  { %p309_p0 = pnand %p308_p13, %p302_p10 }
  0x20   :  { %312 = shalt.err (!%p309_p0)
}
  0x21   :  { %47 = dma.hbm_to_vmem [thread:$0]  %s405_s2, 256, %s42_s28, [#allocation6], %s341_s20, %s341_s20, %s342_s21  }
  0x22   :  { %333 = dma.done.wait [#allocation3], 256  }
  0x23   :  { %334 = vsyncadd [#allocation3], 4294967040 }
  0x24   :  { %335 = dma.done.wait [#allocation6], 512  }
  0x25   :  { %336 = vsyncadd [#allocation6], 4294966784  ;;  %v62_v0 = vlaneseq  ;;  %v344_v1 = vmov 0.0   ;;  %vm345_vm0 = vmmov 0   ;;  %v97_v6 = vld [vmem:[#allocation7] sm:$0xff]  ;;  %v98_v7 = vld [vmem:[#allocation7 + $0x8] sm:$0xff] }
  0x26   :  { %227 = vmatprep.subr.bf16.mxu0 %v344_v1  ;;  %229 = vmatprep.mubr.msk.bf16.mxu0 %vm345_vm0, %v344_v1  ;;  %v94_v8 = vld [vmem:[#allocation2] sm:$0xff]  ;;  %v99_v10 = vpack.c.bf16 %v98_v7, %v97_v6  ;;  %v95_v11 = vld [vmem:[#allocation2 + $0x8] sm:$0xff]  ;;  %v60_v12 = vld [vmem:[#allocation5] sm:$0xff]  ;;  %vm73_vm3 = vcmask 130048   ;;  %vm199_vm4 = vcmask 261120   ;;  %s346_s5 = smov [#allocation8]  }
  0x27   :  { %v63_v2 = vshrl.u32 %v62_v0, 7  ;;  %v66_v3 = vand.u32 127, %v62_v0  ;;  %233 = vmatprep.subr.bf16.mxu1 %v344_v1  ;;  %235 = vmatprep.mubr.msk.bf16.mxu1 %vm345_vm0, %v344_v1  ;;  %v61_v13 = vld [vmem:[#allocation5 + $0x8] sm:$0xff]  ;;  %v96_v14 = vpack.c.bf16 %v95_v11, %v94_v8  ;;  %v221_v41 = vld [vmem:[%s406_s3] ss:$0 sm:$0xff]  ;;  %s207_s6 = sshll.u32 %s346_s5, 4  ;;  %s208_s6 = int_to_ptr.vmem [resolvable:$true] %s207_s6 }
  0x28   :  { %228 = vmatpush3.bf16.msra.mxu0 %v99_v10  ;;  %s313_s7 = scalar_lea.vmem %s208_s6, 256  ;;  %p318_p2 = scmp.lt.s32.totalorder %s208_s6, %s208_s6 }
  0x29   :  { %vm67_vm1 = vcmp.eq.s32.totalorder %v63_v2, %v66_v3  ;;  %v64_v4 = vadd.s32 8, %v63_v2  ;;  %p314_p1 = scmp.ne.s32.totalorder %s208_s6, %s313_s7  ;;  %p319_p3 = scmp.lt.s32.totalorder %s313_s7, %s313_s7 }
  0x2a   :  { %v69_v5 = vsel %vm67_vm1, 1.0, %v344_v1 }
  0x2b   :  { %vm68_vm2 = vcmp.eq.s32.totalorder %v64_v4, %v66_v3  ;;  %v71_v15 = vadd.f32 %v69_v5, %v60_v12  ;;  %230 = vmatmul.mubr.msk.bf16.vlgmr.msra.gmra.mxu0 %vm73_vm3, %v96_v14  ;;  %p320_p4 = por %p319_p3, %p318_p2 }
  0x2c   :  { %v70_v9 = vsel %vm68_vm2, 1.0, %v344_v1 }
  0x2d   :  { %v72_v16 = vadd.f32 %v70_v9, %v61_v13  ;;  %v74_v17 = vsel %vm73_vm3, %v71_v15, 0.0  ;;  %p321_p5 = pnand %p320_p4, %p314_p1 }
  0x2e   :  { %75 = vadd.xlane.f32.xlu0 %v74_v17 }
  0x2f   :  { %v77_v18 = vsel %vm73_vm3, %v72_v16, 0.0 }
  0x30   :  { %v82_v19 = vadd.f32 %v77_v18, %v74_v17 }
  0x32   :  { %78 = vadd.xlane.f32.xlu0 %v77_v18  ;;  %v83_v20 = vrot.slane %v82_v19, 4 }
  0x34   :  { %v84_v21 = vadd.f32 %v83_v20, %v82_v19 }
  0x36   :  { %v85_v22 = vrot.slane %v84_v21, 2 }
  0x38   :  { %v86_v24 = vadd.f32 %v85_v22, %v84_v21 }
  0x3a   :  { %v87_v25 = vrot.slane %v86_v24, 1 }
  0x3c   :  { %v88_v27 = vadd.f32 %v87_v25, %v86_v24 }
  0xb7   :  { %v76_v23 = vpop.xlane.xlu0 %75 }
  0xb8   :  { %247 = vrsqrt.f32 %v76_v23 }
  0xbb   :  { %v79_v26 = vpop.xlane.xlu0 %78 }
  0xbc   :  { %249 = vrsqrt.f32 %v79_v26 }
  0xbd   :  { %251 = vrsqrt.f32 %v88_v27 }
  0xc5   :  { %v248_v28 = vpop.eup %247 }
  0xc6   :  { %v90_v31 = vmul.f32 %v248_v28, %v71_v15 }
  0xc9   :  { %v250_v29 = vpop.eup %249 }
  0xca   :  { %v91_v32 = vmul.f32 %v250_v29, %v72_v16  ;;  %v252_v33 = vpop.eup %251 }
  0xcb   :  { %v92_v36 = vmul.f32 %v252_v33, %v90_v31 }
  0xcc   :  { %v93_v37 = vmul.f32 %v252_v33, %v91_v32 }
  0xce   :  { %v144_v40 = vpack.c.bf16 %v93_v37, %v92_v36 }
  0xeb   :  { %v137_v30 = vpop.f32.mrf.mxu0 }
  0xed   :  { %v231_v34 = vpop.f32.mrf.mxu0 }
  0xef   :  { %v140_v35 = vpop.f32.mrf.mxu0 }
  0xf0   :  { %v145_v38 = vpack.c.bf16 %v140_v35, %v137_v30 }
  0xf1   :  { %v232_v39 = vpop.f32.mrf.mxu0 }
  0xf2   :  { %234 = vmatpush3.bf16.msra.mxu1 %v145_v38 }
  0xf5   :  { %236 = vmatmul.mubr.msk.bf16.vlgmr.msra.gmra.mxu1 %vm73_vm3, %v144_v40 }
 0x1b5   :  { %v190_v42 = vpop.f32.mrf.mxu1 }
 0x1b6   :  { %v191_v43 = vadd.f32 %v221_v41, %v190_v42 }
 0x1b7   :  { %v237_v44 = vpop.f32.mrf.mxu1 }
 0x1b8   :  { %v197_v45 = vmax.f32 %v191_v43, 0.0 }
 0x1b9   :  { %v193_v46 = vpop.f32.mrf.mxu1 }
 0x1ba   :  { %v194_v47 = vadd.f32 %v221_v41, %v193_v46  ;;  %200 = vst.msk [vmem:[#allocation8] sm:$0xff] %vm199_vm4, %v197_v45 }
 0x1bb   :  { %v238_v48 = vpop.f32.mrf.mxu1 }
 0x1bc   :  { %v198_v49 = vmax.f32 %v194_v47, 0.0 }
 0x1be   :  { %201 = vst.msk [vmem:[#allocation8 + $0x8] sm:$0xff] %vm199_vm4, %v198_v49 }
 0x1bf   :  { %324 = shalt.err (!%p321_p5)
}
 0x1c0   :  { %213 = dma.vmem_to_hbm [thread:$0]  %s208_s6, 256, %s407_s4, [#allocation4], %s341_s20, %s341_s20, %s342_s21  }
 0x1c1   :  { %337 = dma.done.wait [#allocation4], 256  }
 0x1c2   :  { %338 = vsyncadd [#allocation4], 4294967040 }
 0x1c3   :  { %217 = vsyncpa [#allocation3], 1 }
 0x1c4   :  { %218 = vsyncpa [#allocation6], 1 }
 0x1c5   :  { %219 = vsyncpa [#allocation4], 1 }

</bundles_post_ra>
